<compile_context>
chip_gen: v6e
topology: v6e:2x2x1
jax: 0.10.0
libtpu: 0.0.40
codegen_flags: <defaults>
</compile_context>

<pallas_src>
import functools

import jax
import jax.numpy as jnp
from jax.experimental import pallas as pl
from jax.experimental.pallas import tpu as pltpu

BN_EPS = 1e-5
BBOX_EPS = 1e-6
_MiB = 1024 * 1024


# ---------------------------------------------------------------------------
# tiling helpers
# ---------------------------------------------------------------------------
def _vmem_limit_bytes():
    """Scoped-VMEM cap derived from the chip's physical VMEM.

    v5e/v6e (128 MiB physical) -> 112 MiB scoped; v7x (64 MiB) -> 48 MiB.
    Falls back to the conservative 48 MiB if the query is unavailable.
    """
    cap = 64 * _MiB
    try:
        cap = int(pltpu.get_tpu_info().vmem_capacity_bytes)
    except Exception:
        pass
    return int(max(32 * _MiB, min(cap - 16 * _MiB, 112 * _MiB)))


def _pick_row_block(n, cap=256):
    """Sublane (row) block for the stats pass: multiple of 8 dividing n.

    Capped at 256 rows so the two f32 running partials stay register-friendly.
    """
    if n <= 8 or n % 8 != 0:
        return n                     # full-extent block is always legal
    r = min(n, cap)
    r -= r % 8
    while n % r != 0:
        r -= 8
    return r


def _pick_hw_tile(hw_padded, bytes_per_col, budget):
    """Largest multiple-of-128 HW tile dividing hw_padded within the budget.

    `bytes_per_col` must account for double-buffered streamed blocks AND the
    in-kernel f32 intermediates (per perf review, esp. for v7x's 64 MiB VMEM).
    """
    cap = max(128, (budget // max(bytes_per_col, 1)) // 128 * 128)
    t = min(cap, hw_padded)
    while hw_padded % t != 0:
        t -= 128
    return t


# ---------------------------------------------------------------------------
# kernels
# ---------------------------------------------------------------------------
def _stats_kernel(x_ref, shift_ref, cs_ref, css_ref):
    """Fused streaming stats: shifted sum + shifted sum-of-squares per row.

    Single read of x replaces the previous separate sum / centered-sum passes.
    """
    @pl.when(pl.program_id(1) == 0)
    def _init():
        cs_ref[...] = jnp.zeros_like(cs_ref)
        css_ref[...] = jnp.zeros_like(css_ref)

    d = x_ref[...].astype(jnp.float32) - shift_ref[...]          # (rb, T)
    # Per-tile lane reduce (XLU) stays hidden under the DMA at these block
    # sizes; a wide (rb,128) VPU accumulator was rejected for vreg pressure.
    cs_ref[...] += jnp.sum(d, axis=1, keepdims=True)
    css_ref[...] += jnp.sum(d * d, axis=1, keepdims=True)


def _apply_kernel(x_ref, bbox_ref, wbs_ref, mean_ref, istd_ref, o_ref, *,
                  c, o, use_mxu):
    """Normalize + spatially adaptive modulation for one (batch, HW-tile)."""
    x = x_ref[0].astype(jnp.float32)        # (C, T)
    bbox = bbox_ref[0].astype(jnp.float32)  # (O, T)
    wbs = wbs_ref[0]                        # (2C+1, O), f32

    # rows [0:C)  -> sum_o bbox * w_proj
    # rows [C:2C) -> sum_o bbox * b_proj
    # row  [2C]   -> sum_o bbox            (denominator)
    if use_mxu:
        mod = jnp.dot(wbs, bbox, preferred_element_type=jnp.float32,
                      precision=jax.lax.Precision.HIGH)           # (2C+1, T)
    else:
        # O is tiny: unrolled VPU multiply-accumulate, exact f32, frees the
        # vector-extended slot and avoids MXU result pops entirely.
        mod = wbs[:, 0:1] * bbox[0:1, :]
        for k in range(1, o):
            mod = mod + wbs[:, k:k + 1] * bbox[k:k + 1, :]

    num_w = mod[:c]
    num_b = mod[c:2 * c]
    den = mod[2 * c:2 * c + 1] + BBOX_EPS                         # (1, T)
    # TODO(synk): approx=True (EUP path) is likely fine for these O(1) bbox
    # sums but is kept exact so the result stays well inside 1e-4 tolerance.
    inv_den = pl.reciprocal(den, approx=False)

    x_norm = (x - mean_ref[...]) * istd_ref[...]                  # (C, T)
    o_ref[0] = ((num_w * inv_den + 1.0) * x_norm
                + num_b * inv_den).astype(o_ref.dtype)


# ---------------------------------------------------------------------------
# parameter preprocessing (plain-JAX glue)
# ---------------------------------------------------------------------------
def _spectral_normalize(W, n_iters=30):
    """W / sigma_max(W) via deterministic power iteration.  W: (out, in).

    TODO(synk): PyTorch's spectral_norm keeps a persistent `u` updated once
    per forward; this stateless power iteration is a close deterministic
    approximation of the same sigma.
    """
    u = jnp.ones((W.shape[0],), jnp.float32) / jnp.sqrt(float(W.shape[0]))
    for _ in range(n_iters):
        v = W.T @ u
        v = v / (jnp.linalg.norm(v) + 1e-12)
        u = W @ v
        u = u / (jnp.linalg.norm(u) + 1e-12)
    sigma = u @ (W @ v)
    return W / sigma


# ---------------------------------------------------------------------------
# wrapper
# ---------------------------------------------------------------------------
def spatial_adaptive_syn_batchnorm2d(x, vector, bbox, params, eps=BN_EPS):
    """x: (b, c, h, w) NCHW; vector: (b*o, dim_w); bbox: (b, o, bh, bw)."""
    b, c, h, w = x.shape
    bb_, o, bh, bw = bbox.shape
    if (bh, bw) != (h, w):
        # TODO(synk): jax.image.resize bilinear may not bit-match
        # F.interpolate(mode='bilinear', align_corners=False) at the borders.
        bbox = jax.image.resize(bbox, (bb_, o, h, w), method="bilinear")
    hw = h * w
    hw_pad = -(-hw // 128) * 128
    pad = hw_pad - hw

    vmem_limit = _vmem_limit_bytes()
    budget = vmem_limit // 2
    x_isz = x.dtype.itemsize
    bbox_isz = bbox.dtype.itemsize

    # ---- spectral norm + tiny projections (hoisted out of the kernels) -----
    ww = _spectral_normalize(params["weight_proj_w"].astype(jnp.float32))
    bw_m = _spectral_normalize(params["bias_proj_w"].astype(jnp.float32))
    vec = vector.astype(jnp.float32)
    w_proj = (vec @ ww.T + params["weight_proj_b"]).reshape(b, o, c)   # (B,O,C)
    b_proj = (vec @ bw_m.T + params["bias_proj_b"]).reshape(b, o, c)   # (B,O,C)
    # Stacked (B, 2C+1, O): rows [0:C)=w^T, [C:2C)=b^T, [2C]=ones (for den).
    wbs = jnp.concatenate(
        [jnp.swapaxes(w_proj, 1, 2),
         jnp.swapaxes(b_proj, 1, 2),
         jnp.ones((b, 1, o), jnp.float32)], axis=1)

    # ---- pass 1: fused shifted stats (single HBM read of x) ----------------
    x_rows = x.reshape(b * c, hw)
    shift_raw = x_rows[:, 0:1]                       # (BC, 1), x dtype
    shift = shift_raw.astype(jnp.float32)
    if pad:
        # pad each row with its own shift so padded columns contribute 0
        x_rows = jnp.concatenate(
            [x_rows, jnp.broadcast_to(shift_raw, (b * c, pad))], axis=1)

    rb = _pick_row_block(b * c)
    nrb = (b * c) // rb
    st_tile = _pick_hw_tile(hw_pad, rb * (2 * x_isz + 8), budget)
    nst = hw_pad // st_tile

    stats_cost = pl.CostEstimate(
        flops=4 * b * c * hw_pad,
        transcendentals=0,
        bytes_accessed=b * c * hw_pad * x_isz + 3 * b * c * 4)

    row_cs, row_css = pl.pallas_call(
        _stats_kernel,
        out_shape=(jax.ShapeDtypeStruct((b * c, 1), jnp.float32),
                   jax.ShapeDtypeStruct((b * c, 1), jnp.float32)),
        grid=(nrb, nst),
        in_specs=[pl.BlockSpec((rb, st_tile), lambda r, t: (r, t)),
                  pl.BlockSpec((rb, 1), lambda r, t: (r, 0))],
        out_specs=[pl.BlockSpec((rb, 1), lambda r, t: (r, 0)),
                   pl.BlockSpec((rb, 1), lambda r, t: (r, 0))],
        compiler_params=pltpu.CompilerParams(
            dimension_semantics=("parallel", "arbitrary"),
            vmem_limit_bytes=vmem_limit),
        cost_estimate=stats_cost,
    )(x_rows, shift)

    # Recombine shifted per-row stats -> per-channel mean/var (no E[x^2]-E[x]^2
    # cancellation: everything is in terms of deviations from the shifts).
    n_elems = float(b * hw)
    cs = row_cs.reshape(b, c)
    css = row_css.reshape(b, c)
    s = shift.reshape(b, c)
    mean_c = jnp.sum(s * hw + cs, axis=0) / n_elems                    # (C,)
    delta = s - mean_c[None, :]
    var_c = jnp.sum(css + 2.0 * delta * cs + hw * delta * delta,
                    axis=0) / n_elems                                  # biased
    inv_std_c = jax.lax.rsqrt(var_c + eps)
    # TODO(synk): running_mean/running_var momentum update of the synchronized
    # BN is a training-time side effect and is not part of the returned output.

    # ---- pass 2: tiled, pipelined normalize + modulation --------------------
    x3 = x.reshape(b, c, hw)
    bbox3 = bbox.reshape(b, o, hw)
    if pad:
        x3 = jnp.pad(x3, ((0, 0), (0, 0), (0, pad)))
        bbox3 = jnp.pad(bbox3, ((0, 0), (0, 0), (0, pad)))

    # Per-lane-column bytes: double-buffered streamed x/out/bbox blocks plus
    # the live in-kernel f32 intermediates (x upcast, mod, x_norm, maps, ...).
    bpc_apply = (c * x_isz * 2) + (c * x_isz * 2) + (o * bbox_isz * 2) \
        + 4 * (6 * c + o + 2)
    ap_tile = _pick_hw_tile(hw_pad, bpc_apply, budget)
    nap = hw_pad // ap_tile

    apply_cost = pl.CostEstimate(
        flops=b * hw_pad * (2 * c * o + 8 * c),
        transcendentals=b * hw_pad,
        bytes_accessed=(2 * b * c * hw_pad * x_isz
                        + b * o * hw_pad * bbox_isz
                        + b * (2 * c + 1) * o * 4))

    # NOTE: for C (or O) below 8 the (1, C, T) block runs at reduced sublane
    # occupancy; padding C would require an extra HBM copy of x that costs
    # more than it saves, so it is intentionally not done here.
    out = pl.pallas_call(
        functools.partial(_apply_kernel, c=c, o=o, use_mxu=(o > 8)),
        out_shape=jax.ShapeDtypeStruct((b, c, hw_pad), x.dtype),
        grid=(b, nap),
        in_specs=[
            pl.BlockSpec((1, c, ap_tile), lambda bi, t: (bi, 0, t)),
            pl.BlockSpec((1, o, ap_tile), lambda bi, t: (bi, 0, t)),
            pl.BlockSpec((1, 2 * c + 1, o), lambda bi, t: (bi, 0, 0)),
            pl.BlockSpec((c, 1), lambda bi, t: (0, 0)),
            pl.BlockSpec((c, 1), lambda bi, t: (0, 0)),
        ],
        out_specs=pl.BlockSpec((1, c, ap_tile), lambda bi, t: (bi, 0, t)),
        compiler_params=pltpu.CompilerParams(
            dimension_semantics=("parallel", "parallel"),
            vmem_limit_bytes=vmem_limit),
        cost_estimate=apply_cost,
    )(x3, bbox3, wbs, mean_c.reshape(c, 1), inv_std_c.reshape(c, 1))

    if pad:
        out = out[:, :, :hw]
    return out.reshape(b, c, h, w)


# ---------------------------------------------------------------------------
# plain-JAX reference (mirrors the PyTorch forward, training-mode BN)
# ---------------------------------------------------------------------------
def _reference(x, vector, bbox, params, eps=BN_EPS):
    b, c, h, w = x.shape
    _, o, _, _ = bbox.shape
    mean = jnp.mean(x, axis=(0, 2, 3), keepdims=True)
    var = jnp.mean((x - mean) ** 2, axis=(0, 2, 3), keepdims=True)
    out = (x - mean) / jnp.sqrt(var + eps)
    ww = _spectral_normalize(params["weight_proj_w"])
    bw_ = _spectral_normalize(params["bias_proj_w"])
    weight = (vector @ ww.T + params["weight_proj_b"]).reshape(b, o, c)
    bias = (vector @ bw_.T + params["bias_proj_b"]).reshape(b, o, c)
    bbox_e = bbox[:, :, None, :, :]                          # (b,o,1,h,w)
    den = jnp.sum(bbox_e, axis=1) + BBOX_EPS                 # (b,1,h,w)
    wmap = jnp.sum(bbox_e * weight[:, :, :, None, None], axis=1) / den + 1.0
    bmap = jnp.sum(bbox_e * bias[:, :, :, None, None], axis=1) / den
    return wmap * out + bmap


if __name__ == "__main__":
    key = jax.random.PRNGKey(0)
    b, c, h, w = 2, 4, 16, 16
    o = 3
    num_w = 32

    k1, k2, k3, k4, k5, k6, k7 = jax.random.split(key, 7)
    x = jax.random.normal(k1, (b, c, h, w), jnp.float32)
    vector = jax.random.normal(k2, (b * o, num_w), jnp.float32)
    bbox = (jax.random.uniform(k3, (b, o, h, w), jnp.float32) > 0.5).astype(
        jnp.float32)

    params = {
        "weight_proj_w": jax.random.normal(k4, (c, num_w), jnp.float32) * 0.1,
        "weight_proj_b": jax.random.normal(k5, (c,), jnp.float32) * 0.1,
        "bias_proj_w": jax.random.normal(k6, (c, num_w), jnp.float32) * 0.1,
        "bias_proj_b": jax.random.normal(k7, (c,), jnp.float32) * 0.1,
    }

    out = spatial_adaptive_syn_batchnorm2d(x, vector, bbox, params)
    out = jax.block_until_ready(out)

    ref = jax.block_until_ready(_reference(x, vector, bbox, params))
    assert out.shape == (b, c, h, w)
    assert jnp.allclose(out, ref, atol=1e-4, rtol=1e-4), (
        float(jnp.max(jnp.abs(out - ref))))
    print("KERNEL_OK")
</pallas_src>

<mosaic_0001>
module attributes {stable_mosaic.version = 11 : i64} {
  func.func @_stats_kernel(%arg0: i32, %arg1: i32, %arg2: memref<8x256xf32, #tpu.memory_space<vmem>>, %arg3: memref<8x1xf32, #tpu.memory_space<vmem>>, %arg4: memref<8x1xf32, #tpu.memory_space<vmem>>, %arg5: memref<8x1xf32, #tpu.memory_space<vmem>>) attributes {dimension_semantics = [#tpu.dimension_semantics<parallel>, #tpu.dimension_semantics<arbitrary>], iteration_bounds = array<i64: 1, 1>, scalar_prefetch = 0 : i64, scratch_operands = 0 : i64, tpu.core_type = #tpu.core_type<tc>, window_params = [{transform_indices = @transform_0, window_bounds = array<i64: 8, 256>}, {transform_indices = @transform_1, window_bounds = array<i64: 8, 1>}, {transform_indices = @transform_2, window_bounds = array<i64: 8, 1>}, {transform_indices = @transform_3, window_bounds = array<i64: 8, 1>}]} {
    %c0_i32 = arith.constant 0 : i32
    %0 = arith.cmpi eq, %arg1, %c0_i32 : i32
    %1 = arith.extui %0 : i1 to i32
    %c0_i32_0 = arith.constant 0 : i32
    %2 = arith.cmpi ne, %1, %c0_i32_0 : i32
    scf.if %2 {
      %cst_13 = arith.constant 0.000000e+00 : f32
      %18 = vector.broadcast %cst_13 : f32 to vector<8x1xf32>
      %c0_14 = arith.constant 0 : index
      %c0_15 = arith.constant 0 : index
      %19 = vector.load %arg4[%c0_14, %c0_15] : memref<8x1xf32, #tpu.memory_space<vmem>>, vector<8x1xf32>
      tpu.vector_store %arg4[%c0_14, %c0_15], %18 {strides = array<i32>} : memref<8x1xf32, #tpu.memory_space<vmem>>, vector<8x1xf32>,
      %cst_16 = arith.constant 0.000000e+00 : f32
      %20 = vector.broadcast %cst_16 : f32 to vector<8x1xf32>
      %c0_17 = arith.constant 0 : index
      %c0_18 = arith.constant 0 : index
      %21 = vector.load %arg5[%c0_17, %c0_18] : memref<8x1xf32, #tpu.memory_space<vmem>>, vector<8x1xf32>
      tpu.vector_store %arg5[%c0_17, %c0_18], %20 {strides = array<i32>} : memref<8x1xf32, #tpu.memory_space<vmem>>, vector<8x1xf32>,
    } else {
    }
    %c0 = arith.constant 0 : index
    %c0_1 = arith.constant 0 : index
    %3 = vector.load %arg2[%c0, %c0_1] : memref<8x256xf32, #tpu.memory_space<vmem>>, vector<8x256xf32>
    %c0_2 = arith.constant 0 : index
    %c0_3 = arith.constant 0 : index
    %4 = vector.load %arg3[%c0_2, %c0_3] : memref<8x1xf32, #tpu.memory_space<vmem>>, vector<8x1xf32>
    %5 = vector.broadcast %4 : vector<8x1xf32> to vector<8x256xf32>
    %6 = arith.subf %3, %5 : vector<8x256xf32>
    %c0_4 = arith.constant 0 : index
    %c0_5 = arith.constant 0 : index
    %7 = vector.load %arg4[%c0_4, %c0_5] : memref<8x1xf32, #tpu.memory_space<vmem>>, vector<8x1xf32>
    %cst = arith.constant dense<0.000000e+00> : vector<8xf32>
    %8 = vector.multi_reduction <add>, %6, %cst [1] : vector<8x256xf32> to vector<8xf32>
    %9 = vector.shape_cast %8 : vector<8xf32> to vector<8x1xf32>
    %10 = arith.addf %7, %9 : vector<8x1xf32>
    %c0_6 = arith.constant 0 : index
    %c0_7 = arith.constant 0 : index
    %11 = vector.load %arg4[%c0_6, %c0_7] : memref<8x1xf32, #tpu.memory_space<vmem>>, vector<8x1xf32>
    tpu.vector_store %arg4[%c0_6, %c0_7], %10 {strides = array<i32>} : memref<8x1xf32, #tpu.memory_space<vmem>>, vector<8x1xf32>,
    %c0_8 = arith.constant 0 : index
    %c0_9 = arith.constant 0 : index
    %12 = vector.load %arg5[%c0_8, %c0_9] : memref<8x1xf32, #tpu.memory_space<vmem>>, vector<8x1xf32>
    %13 = arith.mulf %6, %6 : vector<8x256xf32>
    %cst_10 = arith.constant dense<0.000000e+00> : vector<8xf32>
    %14 = vector.multi_reduction <add>, %13, %cst_10 [1] : vector<8x256xf32> to vector<8xf32>
    %15 = vector.shape_cast %14 : vector<8xf32> to vector<8x1xf32>
    %16 = arith.addf %12, %15 : vector<8x1xf32>
    %c0_11 = arith.constant 0 : index
    %c0_12 = arith.constant 0 : index
    %17 = vector.load %arg5[%c0_11, %c0_12] : memref<8x1xf32, #tpu.memory_space<vmem>>, vector<8x1xf32>
    tpu.vector_store %arg5[%c0_11, %c0_12], %16 {strides = array<i32>} : memref<8x1xf32, #tpu.memory_space<vmem>>, vector<8x1xf32>,
    return
  }
  func.func @transform_0(%arg0: i32, %arg1: i32) -> (i32, i32) {
    %c0_i32 = arith.constant 0 : i32
    return %arg0, %arg1 : i32, i32
  }
  func.func @transform_1(%arg0: i32, %arg1: i32) -> (i32, i32) {
    %c0_i32 = arith.constant 0 : i32
    %c0_i32_0 = arith.constant 0 : i32
    return %arg0, %c0_i32 : i32, i32
  }
  func.func @transform_2(%arg0: i32, %arg1: i32) -> (i32, i32) {
    %c0_i32 = arith.constant 0 : i32
    %c0_i32_0 = arith.constant 0 : i32
    return %arg0, %c0_i32 : i32, i32
  }
  func.func @transform_3(%arg0: i32, %arg1: i32) -> (i32, i32) {
    %c0_i32 = arith.constant 0 : i32
    %c0_i32_0 = arith.constant 0 : i32
    return %arg0, %c0_i32 : i32, i32
  }
}

</mosaic_0001>

<bundles_post_ra>
// kernel: tpu_custom_call.1
= control target key start
LH: loop header
LB: loop body
LE: loop exit
PB: predicated region body
PF: predicated region fallthrough
CT: control target
= control target key end

     0   :  { %9 = vsyncpa [#allocation3], 0  ;;  %s92_s12 = smov [#allocation2]   ;;  %s143_s0 = inlined_call_operand.hbm [shape: f32[8,256], index: 0, kind: input, shape index: {}]   ;;  %s144_s1 = inlined_call_operand.vmem [shape: f32[8,1], index: 1, kind: input, shape index: {}]   ;;  %s145_s2 = inlined_call_operand.vmem [shape: f32[8,1], index: 2, kind: output, shape index: {0}]   ;;  %s146_s3 = inlined_call_operand.vmem [shape: f32[8,1], index: 3, kind: output, shape index: {1}]  }
   0x1   :  { %s16_s13 = sshll.u32 %s92_s12, 4  ;;  %s17_s13 = int_to_ptr.vmem [resolvable:$true] %s16_s13 }
   0x2   :  { %s78_s14 = scalar_lea.vmem %s17_s13, 256  ;;  %p83_p1 = scmp.lt.s32.totalorder %s17_s13, %s17_s13 }
   0x3   :  { %p79_p0 = scmp.ne.s32.totalorder %s17_s13, %s78_s14  ;;  %p84_p2 = scmp.lt.s32.totalorder %s78_s14, %s78_s14 }
   0x5   :  { %p85_p3 = por %p84_p2, %p83_p1 }
   0x7   :  { %p86_p4 = pnand %p85_p3, %p79_p0 }
   0x9   :  { %89 = shalt.err (!%p86_p4)
}
   0xa   :  { %19 = dma.hbm_to_vmem [thread:$0]  %s143_s0, 256, %s17_s13, [#allocation3]  }
   0xb   :  { %90 = dma.done.wait [#allocation3], 256  }
   0xc   :  { %91 = vsyncadd [#allocation3], 4294967040  ;;  %v93_v0 = vmov 0   ;;  %v34_v1 = vld [vmem:[%s144_s1] sm:$0xff]  ;;  %vm29_vm0 = vcmask 7168   ;;  %v94_v2 = vmov 0.0  }
   0xd   :  { %69 = vset.pattern.permute.xlu0 %v93_v0  ;;  %30 = vst.msk [vmem:[%s145_s2] sm:$0xff] %vm29_vm0, %v94_v2  ;;  %31 = vst.msk [vmem:[%s146_s3] sm:$0xff] %vm29_vm0, %v94_v2  ;;  %v32_v3 = vld [vmem:[#allocation2] sm:$0xff]  ;;  %v33_v4 = vld [vmem:[#allocation2 + $0x8] sm:$0xff] }
   0xe   :  { %37 = vperm.xlu0 %69, %v34_v1  }
  0x14   :  { %v42_v12 = vld [vmem:[%s145_s2] sm:$0xff] }
  0x15   :  { %v49_v14 = vld [vmem:[%s146_s3] sm:$0xff] }
  0x89   :  { %v38_v5 = vpop.permute.xlu0 %37 }
  0x8a   :  { %v40_v6 = vsub.f32 %v32_v3, %v38_v5  ;;  %v41_v7 = vsub.f32 %v33_v4, %v38_v5 }
  0x8c   :  { %v43_v8 = vadd.f32 %v41_v7, %v40_v6  ;;  %v50_v9 = vmul.f32 %v40_v6, %v40_v6  ;;  %v51_v10 = vmul.f32 %v41_v7, %v41_v7 }
  0x8e   :  { %44 = vadd.xlane.f32.xlu0 %v43_v8  ;;  %v52_v11 = vadd.f32 %v51_v10, %v50_v9 }
  0x90   :  { %53 = vadd.xlane.f32.xlu1 %v52_v11 }
 0x117   :  { %v45_v13 = vpop.xlane.xlu0 %44 }
 0x118   :  { %v46_v15 = vadd.f32 %v45_v13, %v42_v12 }
 0x119   :  { %v54_v16 = vpop.xlane.xlu1 %53 }
 0x11a   :  { %48 = vst.msk [vmem:[%s145_s2] sm:$0xff] %vm29_vm0, %v46_v15  ;;  %v55_v17 = vadd.f32 %v54_v16, %v49_v14 }
 0x11c   :  { %56 = vst.msk [vmem:[%s146_s3] sm:$0xff] %vm29_vm0, %v55_v17 }
 0x11d   :  { %65 = vsyncpa [#allocation3], 1 }

</bundles_post_ra>
